<compile_context>
chip_gen: v7x
topology: tpu7x:2x2x1
jax: 0.10.0
libtpu: 0.0.40
codegen_flags: <defaults>
</compile_context>

<pallas_src>
import jax
import jax.numpy as jnp
from jax import lax
from jax.experimental import pallas as pl
from jax.experimental.pallas import tpu as pltpu

_EPS = 1e-12  # F.normalize default eps


def _cdiv(a, b):
    return -(-a // b)


def _round_up(x, m):
    return (x + m - 1) // m * m


def _make_stop_gradient_kernel(batch, block_rows):
    """Kernel closure; `batch`/`block_rows` are static Python ints."""
    has_tail = (batch % block_rows) != 0

    def kernel(pred_q_ref, proj_k_ref, pred_k_ref, proj_q_ref, out_ref):
        eps2 = jnp.float32(_EPS * _EPS)

        if has_tail:
            row0 = pl.program_id(0) * block_rows
            row_idx = row0 + lax.broadcasted_iota(jnp.int32, (block_rows, 1), 0)
            valid = row_idx < batch  # [TB, 1] bool

        def block_cos_sum(p, z):
            # Cast per-tile (HBM traffic stays in the input dtype); accumulate in f32.
            p = p.astype(jnp.float32)
            z = z.astype(jnp.float32)
            # Three lane-axis reductions instead of normalize-then-multiply:
            dot = jnp.sum(p * z, axis=1, keepdims=True)   # [TB, 1]
            pn2 = jnp.sum(p * p, axis=1, keepdims=True)   # [TB, 1]
            zn2 = jnp.sum(z * z, axis=1, keepdims=True)   # [TB, 1]
            # 1/max(||x||, eps) == rsqrt(max(||x||^2, eps^2)) (exact semantics).
            cos = dot * lax.rsqrt(jnp.maximum(pn2, eps2)) \
                      * lax.rsqrt(jnp.maximum(zn2, eps2))
            if has_tail:
                # Select (not multiply): garbage rows in the partial last block
                # contribute exactly 0 even if they produced NaN/Inf.
                cos = jnp.where(valid, cos, jnp.float32(0.0))
            return jnp.sum(cos)  # scalar: sum of row cosines in this block

        s = block_cos_sum(pred_q_ref[...], proj_k_ref[...]) + \
            block_cos_sum(pred_k_ref[...], proj_q_ref[...])
        # Lane-dense partial-sum output block (wrapper reads element [0, 0]).
        out_ref[...] = jnp.full(out_ref.shape, s, dtype=jnp.float32)

    return kernel


def _vmem_budget_bytes():
    """Return (pipeline_budget_bytes, vmem_limit_bytes) per TPU generation."""
    try:
        info = pltpu.get_tpu_info()
        vmem_cap = int(getattr(info, "vmem_capacity_bytes", 0))
    except Exception:
        vmem_cap = 0
    if vmem_cap >= 96 * 1024 * 1024:
        # v5e / v6e: 128 MiB physical VMEM. Raise scoped limit explicitly so
        # the default (16/32 MiB) doesn't cap the bigger tiles.
        return 26 * 1024 * 1024, 48 * 1024 * 1024
    if vmem_cap > 0:
        # v7x: 64 MiB physical per TensorCore -> leave headroom for temporaries.
        return 24 * 1024 * 1024, 40 * 1024 * 1024
    # Unknown backend / query failed: conservative (works everywhere).
    return 12 * 1024 * 1024, 32 * 1024 * 1024


def _choose_block_rows(batch, feat, itemsize, budget_bytes):
    b8 = _round_up(batch, 8)
    # 4 inputs x 2 pipeline buffers per grid step, plus ~2 tile-rows of f32
    # compiler temporaries for the in-kernel casts / elementwise products.
    per_row_bytes = max(feat * (itemsize * 4 * 2 + 4 * 2), 1)
    tb = (budget_bytes // per_row_bytes) // 8 * 8
    tb = max(8, min(1024, tb))
    # Keep >= 2 blocks so the grid can split across v7x's two TensorCores.
    tb = min(tb, max(8, _round_up(_cdiv(batch, 2), 8)))
    tb = min(tb, b8)
    nb = _cdiv(batch, tb)
    # Prefer an even block count for megacore load balance (cheap nudge).
    if nb > 1 and nb % 2 == 1:
        tb_even = max(8, _round_up(_cdiv(batch, nb + 1), 8))
        if _cdiv(batch, tb_even) % 2 == 0:
            tb = tb_even
    return int(tb)


def stop_gradient_loss(q, k, projected_q, projected_k, predicted_q, predicted_k,
                       m=None, *, block_rows=None):
    # q, k, m are unused in the reference forward pass.
    del q, k, m
    # .detach() on the projected branches (forward values unaffected).
    # TODO(synk): custom VJP for the pallas_call if gradients through this loss are needed.
    projected_q = lax.stop_gradient(projected_q)
    projected_k = lax.stop_gradient(projected_k)

    B, D = predicted_q.shape
    itemsize = jnp.dtype(predicted_q.dtype).itemsize
    budget_bytes, vmem_limit_bytes = _vmem_budget_bytes()
    tb = (block_rows if block_rows is not None
          else _choose_block_rows(B, D, itemsize, budget_bytes))
    tb = max(8, (int(tb) // 8) * 8)
    nb = _cdiv(B, tb)

    in_spec = pl.BlockSpec((tb, D), lambda i: (i, 0))
    cost = pl.CostEstimate(
        flops=12 * B * D,            # 3 fused mul-add reductions per row, 2 terms
        transcendentals=4 * B,       # 2 rsqrt per row per term
        bytes_accessed=4 * B * D * itemsize + nb * 8 * 128 * 4,
    )

    partials = pl.pallas_call(
        _make_stop_gradient_kernel(B, tb),
        out_shape=jax.ShapeDtypeStruct((nb, 8, 128), jnp.float32),
        grid=(nb,),
        in_specs=[in_spec, in_spec, in_spec, in_spec],
        out_specs=pl.BlockSpec((1, 8, 128), lambda i: (i, 0, 0)),
        compiler_params=pltpu.CompilerParams(
            dimension_semantics=("parallel",),      # megacore split on v7x
            vmem_limit_bytes=vmem_limit_bytes),
        cost_estimate=cost,
    )(predicted_q, projected_k, predicted_k, projected_q)

    # loss = (D1 + D2)/2 = -(sum_cos1 + sum_cos2) / (2 * B)
    total_cos = jnp.sum(partials[:, 0, 0])
    return -total_cos / jnp.float32(2.0 * B)


def _reference(projected_q, projected_k, predicted_q, predicted_k):
    def d_term(p, z):
        p = p / jnp.maximum(jnp.linalg.norm(p, axis=1, keepdims=True), _EPS)
        z = z / jnp.maximum(jnp.linalg.norm(z, axis=1, keepdims=True), _EPS)
        return -jnp.mean(jnp.sum(p * z, axis=1))
    return (d_term(predicted_q, projected_k) + d_term(predicted_k, projected_q)) / 2


if __name__ == "__main__":
    key = jax.random.PRNGKey(0)

    def make_inputs(B, D):
        ks = jax.random.split(key, 6)
        return tuple(jax.random.normal(kk, (B, D), dtype=jnp.float32) for kk in ks)

    # Small canonical shape (single block, no tail).
    B, D = 8, 32
    q, k, proj_q, proj_k, pred_q, pred_k = make_inputs(B, D)
    loss = stop_gradient_loss(q, k, proj_q, proj_k, pred_q, pred_k)
    loss = jax.block_until_ready(loss)
    ref = _reference(proj_q, proj_k, pred_q, pred_k)
    assert jnp.allclose(loss, ref, atol=1e-5, rtol=1e-5), (loss, ref)

    # Exercise the batch grid + in-kernel tail masking (B=20, tb=8 -> 3 blocks,
    # last block has 4 valid rows). No jnp.pad path anymore.
    B2, D2 = 20, 32
    q2, k2, proj_q2, proj_k2, pred_q2, pred_k2 = make_inputs(B2, D2)
    loss2 = stop_gradient_loss(q2, k2, proj_q2, proj_k2, pred_q2, pred_k2, block_rows=8)
    loss2 = jax.block_until_ready(loss2)
    ref2 = _reference(proj_q2, proj_k2, pred_q2, pred_k2)
    assert jnp.allclose(loss2, ref2, atol=1e-5, rtol=1e-5), (loss2, ref2)

    # Same shape with automatic tile selection (tb capped for 2 blocks, tail masked).
    loss3 = stop_gradient_loss(q2, k2, proj_q2, proj_k2, pred_q2, pred_k2)
    loss3 = jax.block_until_ready(loss3)
    assert jnp.allclose(loss3, ref2, atol=1e-5, rtol=1e-5), (loss3, ref2)

    print("KERNEL_OK")
</pallas_src>

<mosaic_0001>
module attributes {stable_mosaic.version = 11 : i64} {
  func.func @kernel(%arg0: i32, %arg1: memref<8x32xf32, #tpu.memory_space<vmem>>, %arg2: memref<8x32xf32, #tpu.memory_space<vmem>>, %arg3: memref<8x32xf32, #tpu.memory_space<vmem>>, %arg4: memref<8x32xf32, #tpu.memory_space<vmem>>, %arg5: memref<1x8x128xf32, #tpu.memory_space<vmem>>) attributes {dimension_semantics = [#tpu.dimension_semantics<parallel>], iteration_bounds = array<i64: 1>, scalar_prefetch = 0 : i64, scratch_operands = 0 : i64, tpu.core_type = #tpu.core_type<tc>, window_params = [{transform_indices = @transform_0, window_bounds = array<i64: 8, 32>}, {transform_indices = @transform_1, window_bounds = array<i64: 8, 32>}, {transform_indices = @transform_2, window_bounds = array<i64: 8, 32>}, {transform_indices = @transform_3, window_bounds = array<i64: 8, 32>}, {transform_indices = @transform_4, window_bounds = array<i64: 1, 8, 128>}]} {
    %c0 = arith.constant 0 : index
    %c0_0 = arith.constant 0 : index
    %0 = vector.load %arg1[%c0, %c0_0] : memref<8x32xf32, #tpu.memory_space<vmem>>, vector<8x32xf32>
    %c0_1 = arith.constant 0 : index
    %c0_2 = arith.constant 0 : index
    %1 = vector.load %arg2[%c0_1, %c0_2] : memref<8x32xf32, #tpu.memory_space<vmem>>, vector<8x32xf32>
    %2 = arith.mulf %0, %1 : vector<8x32xf32>
    %cst = arith.constant dense<0.000000e+00> : vector<8xf32>
    %3 = vector.multi_reduction <add>, %2, %cst [1] : vector<8x32xf32> to vector<8xf32>
    %4 = vector.shape_cast %3 : vector<8xf32> to vector<8x1xf32>
    %5 = arith.mulf %0, %0 : vector<8x32xf32>
    %cst_3 = arith.constant dense<0.000000e+00> : vector<8xf32>
    %6 = vector.multi_reduction <add>, %5, %cst_3 [1] : vector<8x32xf32> to vector<8xf32>
    %7 = vector.shape_cast %6 : vector<8xf32> to vector<8x1xf32>
    %8 = arith.mulf %1, %1 : vector<8x32xf32>
    %cst_4 = arith.constant dense<0.000000e+00> : vector<8xf32>
    %9 = vector.multi_reduction <add>, %8, %cst_4 [1] : vector<8x32xf32> to vector<8xf32>
    %10 = vector.shape_cast %9 : vector<8xf32> to vector<8x1xf32>
    %cst_5 = arith.constant 1.000000e-24 : f32
    %11 = vector.broadcast %cst_5 : f32 to vector<8x1xf32>
    %12 = arith.maximumf %7, %11 : vector<8x1xf32>
    %13 = math.rsqrt %12 : vector<8x1xf32>
    %14 = arith.mulf %4, %13 : vector<8x1xf32>
    %cst_6 = arith.constant 1.000000e-24 : f32
    %15 = vector.broadcast %cst_6 : f32 to vector<8x1xf32>
    %16 = arith.maximumf %10, %15 : vector<8x1xf32>
    %17 = math.rsqrt %16 : vector<8x1xf32>
    %18 = arith.mulf %14, %17 : vector<8x1xf32>
    %19 = vector.shape_cast %18 : vector<8x1xf32> to vector<1x8x1xf32>
    %cst_7 = arith.constant dense<0.000000e+00> : vector<1xf32>
    %20 = vector.multi_reduction <add>, %19, %cst_7 [1, 2] : vector<1x8x1xf32> to vector<1xf32>
    %21 = vector.shape_cast %20 : vector<1xf32> to vector<1x1x1xf32>
    %22 = vector.extract %21[0, 0, 0] : f32 from vector<1x1x1xf32>
    %c0_8 = arith.constant 0 : index
    %c0_9 = arith.constant 0 : index
    %23 = vector.load %arg3[%c0_8, %c0_9] : memref<8x32xf32, #tpu.memory_space<vmem>>, vector<8x32xf32>
    %c0_10 = arith.constant 0 : index
    %c0_11 = arith.constant 0 : index
    %24 = vector.load %arg4[%c0_10, %c0_11] : memref<8x32xf32, #tpu.memory_space<vmem>>, vector<8x32xf32>
    %25 = arith.mulf %23, %24 : vector<8x32xf32>
    %cst_12 = arith.constant dense<0.000000e+00> : vector<8xf32>
    %26 = vector.multi_reduction <add>, %25, %cst_12 [1] : vector<8x32xf32> to vector<8xf32>
    %27 = vector.shape_cast %26 : vector<8xf32> to vector<8x1xf32>
    %28 = arith.mulf %23, %23 : vector<8x32xf32>
    %cst_13 = arith.constant dense<0.000000e+00> : vector<8xf32>
    %29 = vector.multi_reduction <add>, %28, %cst_13 [1] : vector<8x32xf32> to vector<8xf32>
    %30 = vector.shape_cast %29 : vector<8xf32> to vector<8x1xf32>
    %31 = arith.mulf %24, %24 : vector<8x32xf32>
    %cst_14 = arith.constant dense<0.000000e+00> : vector<8xf32>
    %32 = vector.multi_reduction <add>, %31, %cst_14 [1] : vector<8x32xf32> to vector<8xf32>
    %33 = vector.shape_cast %32 : vector<8xf32> to vector<8x1xf32>
    %cst_15 = arith.constant 1.000000e-24 : f32
    %34 = vector.broadcast %cst_15 : f32 to vector<8x1xf32>
    %35 = arith.maximumf %30, %34 : vector<8x1xf32>
    %36 = math.rsqrt %35 : vector<8x1xf32>
    %37 = arith.mulf %27, %36 : vector<8x1xf32>
    %cst_16 = arith.constant 1.000000e-24 : f32
    %38 = vector.broadcast %cst_16 : f32 to vector<8x1xf32>
    %39 = arith.maximumf %33, %38 : vector<8x1xf32>
    %40 = math.rsqrt %39 : vector<8x1xf32>
    %41 = arith.mulf %37, %40 : vector<8x1xf32>
    %42 = vector.shape_cast %41 : vector<8x1xf32> to vector<1x8x1xf32>
    %cst_17 = arith.constant dense<0.000000e+00> : vector<1xf32>
    %43 = vector.multi_reduction <add>, %42, %cst_17 [1, 2] : vector<1x8x1xf32> to vector<1xf32>
    %44 = vector.shape_cast %43 : vector<1xf32> to vector<1x1x1xf32>
    %45 = vector.extract %44[0, 0, 0] : f32 from vector<1x1x1xf32>
    %46 = arith.addf %22, %45 : f32
    %47 = vector.broadcast %46 : f32 to vector<1x8x128xf32>
    %c0_18 = arith.constant 0 : index
    %c0_19 = arith.constant 0 : index
    %c0_20 = arith.constant 0 : index
    %48 = vector.load %arg5[%c0_18, %c0_19, %c0_20] : memref<1x8x128xf32, #tpu.memory_space<vmem>>, vector<1x8x128xf32>
    tpu.vector_store %arg5[%c0_18, %c0_19, %c0_20], %47 {strides = array<i32>} : memref<1x8x128xf32, #tpu.memory_space<vmem>>, vector<1x8x128xf32>,
    return
  }
  func.func @transform_0(%arg0: i32) -> (i32, i32) {
    %c0_i32 = arith.constant 0 : i32
    %c0_i32_0 = arith.constant 0 : i32
    return %arg0, %c0_i32 : i32, i32
  }
  func.func @transform_1(%arg0: i32) -> (i32, i32) {
    %c0_i32 = arith.constant 0 : i32
    %c0_i32_0 = arith.constant 0 : i32
    return %arg0, %c0_i32 : i32, i32
  }
  func.func @transform_2(%arg0: i32) -> (i32, i32) {
    %c0_i32 = arith.constant 0 : i32
    %c0_i32_0 = arith.constant 0 : i32
    return %arg0, %c0_i32 : i32, i32
  }
  func.func @transform_3(%arg0: i32) -> (i32, i32) {
    %c0_i32 = arith.constant 0 : i32
    %c0_i32_0 = arith.constant 0 : i32
    return %arg0, %c0_i32 : i32, i32
  }
  func.func @transform_4(%arg0: i32) -> (i32, i32, i32) {
    %c0_i32 = arith.constant 0 : i32
    %c0_i32_0 = arith.constant 0 : i32
    %c0_i32_1 = arith.constant 0 : i32
    return %arg0, %c0_i32, %c0_i32_0 : i32, i32, i32
  }
}

</mosaic_0001>

<bundles_post_ra>
// kernel: tpu_custom_call.1
= control target key start
LH: loop header
LB: loop body
LE: loop exit
PB: predicated region body
PF: predicated region fallthrough
CT: control target
= control target key end

     0   :  { %9 = vsyncpa [#allocation3], 0  ;;  %s330_s0 = inlined_call_operand.hbm [shape: f32[8,32], index: 0, kind: input, shape index: {}]   ;;  %s331_s1 = inlined_call_operand.hbm [shape: f32[8,32], index: 1, kind: input, shape index: {}]   ;;  %s332_s2 = inlined_call_operand.hbm [shape: f32[8,32], index: 2, kind: input, shape index: {}]   ;;  %s333_s3 = inlined_call_operand.vmem [shape: f32[8,32], index: 3, kind: input, shape index: {}]   ;;  %s334_s4 = inlined_call_operand.hbm [shape: f32[1,8,128], index: 4, kind: output, shape index: {}]  }
   0x1   :  { %10 = vsyncpa [#allocation6], 0 }
   0x2   :  { %11 = vsyncpa [#allocation4], 0  ;;  %s244_s15 = smov [#allocation5]   ;;  %s245_s17 = smov [#allocation2]  }
   0x3   :  { %s28_s16 = sshll.u32 %s244_s15, 4  ;;  %s18_s18 = sshll.u32 %s245_s17, 4  ;;  %s29_s16 = int_to_ptr.vmem [resolvable:$true] %s28_s16  ;;  %s19_s18 = int_to_ptr.vmem [resolvable:$true] %s18_s18 }
   0x4   :  { %s150_s21 = scalar_lea.hbm %s331_s1, 128 }
   0x5   :  { %p151_p0 = scmp.ne.s32.totalorder %s331_s1, %s150_s21  ;;  %p154_p1 = scmp.lt.u32.totalorder %s150_s21, %s331_s1 }
   0x7   :  { %p156_p2 = pnand %p154_p1, %p151_p0 }
   0x9   :  { %159 = shalt.err (!%p156_p2)
}
   0xa   :  { %s160_s26 = scalar_lea.vmem %s29_s16, 128  ;;  %p165_p4 = scmp.lt.s32.totalorder %s29_s16, %s29_s16 }
   0xb   :  { %p161_p3 = scmp.ne.s32.totalorder %s29_s16, %s160_s26  ;;  %p166_p5 = scmp.lt.s32.totalorder %s160_s26, %s160_s26 }
   0xd   :  { %p167_p6 = por %p166_p5, %p165_p4 }
   0xf   :  { %p168_p7 = pnand %p167_p6, %p161_p3 }
  0x11   :  { %171 = shalt.err (!%p168_p7)
}
  0x12   :  { %31 = dma.hbm_to_vmem [thread:$0]  %s331_s1, 128, %s29_s16, [#allocation6]  }
  0x13   :  { %s172_s5 = scalar_lea.hbm %s330_s0, 128 }
  0x14   :  { %p173_p8 = scmp.ne.s32.totalorder %s330_s0, %s172_s5  ;;  %p176_p9 = scmp.lt.u32.totalorder %s172_s5, %s330_s0 }
  0x16   :  { %p178_p10 = pnand %p176_p9, %p173_p8 }
  0x18   :  { %181 = shalt.err (!%p178_p10)
}
  0x19   :  { %s182_s10 = scalar_lea.vmem %s19_s18, 128  ;;  %p187_p12 = scmp.lt.s32.totalorder %s19_s18, %s19_s18 }
  0x1a   :  { %p183_p11 = scmp.ne.s32.totalorder %s19_s18, %s182_s10  ;;  %p188_p13 = scmp.lt.s32.totalorder %s182_s10, %s182_s10 }
  0x1c   :  { %p189_p0 = por %p188_p13, %p187_p12 }
  0x1e   :  { %p190_p1 = pnand %p189_p0, %p183_p11 }
  0x20   :  { %193 = shalt.err (!%p190_p1)
}
  0x21   :  { %21 = dma.hbm_to_vmem [thread:$0]  %s330_s0, 128, %s19_s18, [#allocation3]  }
  0x22   :  { %s246_s12 = smov [#allocation7]   ;;  %s194_s16 = scalar_lea.hbm %s332_s2, 128 }
  0x23   :  { %s38_s13 = sshll.u32 %s246_s12, 4  ;;  %p195_p2 = scmp.ne.s32.totalorder %s332_s2, %s194_s16  ;;  %s39_s13 = int_to_ptr.vmem [resolvable:$true] %s38_s13 }
  0x24   :  { %p198_p3 = scmp.lt.u32.totalorder %s194_s16, %s332_s2 }
  0x26   :  { %p200_p4 = pnand %p198_p3, %p195_p2 }
  0x28   :  { %203 = shalt.err (!%p200_p4)
}
  0x29   :  { %s204_s22 = scalar_lea.vmem %s39_s13, 128  ;;  %p209_p6 = scmp.lt.s32.totalorder %s39_s13, %s39_s13 }
  0x2a   :  { %p205_p5 = scmp.ne.s32.totalorder %s39_s13, %s204_s22  ;;  %p210_p7 = scmp.lt.s32.totalorder %s204_s22, %s204_s22 }
  0x2c   :  { %p211_p8 = por %p210_p7, %p209_p6 }
  0x2e   :  { %p212_p9 = pnand %p211_p8, %p205_p5 }
  0x30   :  { %215 = shalt.err (!%p212_p9)
}
  0x31   :  { %41 = dma.hbm_to_vmem [thread:$0]  %s332_s2, 128, %s39_s13, [#allocation6]  }
  0x32   :  { %238 = dma.done.wait [#allocation3], 128  }
  0x33   :  { %239 = vsyncadd [#allocation3], 4294967168 }
  0x34   :  { %240 = dma.done.wait [#allocation6], 256  }
  0x35   :  { %241 = vsyncadd [#allocation6], 4294967040  ;;  %v53_v0 = vld [vmem:[#allocation2] sm:$0xff]  ;;  %vm56_vm0 = vcmask 261120   ;;  %v54_v1 = vld [vmem:[#allocation5] sm:$0xff]  ;;  %vm74_vm1 = vcmask 7168  }
  0x36   :  { %v85_v2 = vld [vmem:[#allocation7] sm:$0xff]  ;;  %v60_v3 = vmul.f32 %v53_v0, %v53_v0  ;;  %v64_v4 = vmul.f32 %v54_v1, %v54_v1  ;;  %v86_v6 = vld [vmem:[%s333_s3] sm:$0xff]  ;;  %v55_v12 = vmul.f32 %v54_v1, %v53_v0  ;;  %s247_s3 = smov [#allocation8]  }
  0x37   :  { %v91_v5 = vmul.f32 %v85_v2, %v85_v2  ;;  %v95_v7 = vmul.f32 %v86_v6, %v86_v6  ;;  %v87_v13 = vmul.f32 %v86_v6, %v85_v2  ;;  %s124_s25 = sshll.u32 %s247_s3, 4  ;;  %s125_s25 = int_to_ptr.vmem [resolvable:$true] %s124_s25 }
  0x38   :  { %v61_v8 = vsel %vm56_vm0, %v60_v3, 0.0  ;;  %v65_v9 = vsel %vm56_vm0, %v64_v4, 0.0  ;;  %v57_v14 = vsel %vm56_vm0, %v55_v12, 0.0  ;;  %s216_s28 = scalar_lea.vmem %s125_s25, 128  ;;  %p221_p11 = scmp.lt.s32.totalorder %s125_s25, %s125_s25 }
  0x39   :  { %62 = vadd.xlane.f32.xlu0 %v61_v8  ;;  %66 = vadd.xlane.f32.xlu1 %v65_v9  ;;  %v92_v10 = vsel %vm56_vm0, %v91_v5, 0.0  ;;  %v96_v11 = vsel %vm56_vm0, %v95_v7, 0.0  ;;  %v88_v15 = vsel %vm56_vm0, %v87_v13, 0.0  ;;  %p217_p10 = scmp.ne.s32.totalorder %s125_s25, %s216_s28  ;;  %p222_p12 = scmp.lt.s32.totalorder %s216_s28, %s216_s28 }
  0x3b   :  { %p223_p13 = por %p222_p12, %p221_p11 }
  0x3d   :  { %93 = vadd.xlane.f32.xlu0 %v92_v10  ;;  %97 = vadd.xlane.f32.xlu1 %v96_v11  ;;  %p224_p0 = pnand %p223_p13, %p217_p10 }
  0x41   :  { %58 = vadd.xlane.f32.xlu0 %v57_v14  ;;  %89 = vadd.xlane.f32.xlu1 %v88_v15 }
  0xc6   :  { %v63_v16 = vpop.xlane.xlu0 %62  ;;  %v67_v17 = vpop.xlane.xlu1 %66 }
  0xc7   :  { %v68_v18 = vmax.f32 %v63_v16, 1e-24  ;;  %v71_v19 = vmax.f32 %v67_v17, 1e-24 }
  0xc9   :  { %142 = vrsqrt.f32 %v68_v18 }
  0xca   :  { %144 = vrsqrt.f32 %v71_v19  ;;  %v94_v20 = vpop.xlane.xlu0 %93  ;;  %v98_v21 = vpop.xlane.xlu1 %97 }
  0xcb   :  { %v99_v22 = vmax.f32 %v94_v20, 1e-24  ;;  %v102_v23 = vmax.f32 %v98_v21, 1e-24 }
  0xcd   :  { %146 = vrsqrt.f32 %v99_v22 }
  0xce   :  { %148 = vrsqrt.f32 %v102_v23  ;;  %v59_v24 = vpop.xlane.xlu0 %58  ;;  %v90_v28 = vpop.xlane.xlu1 %89 }
  0xd3   :  { %v143_v25 = vpop.eup %142 }
  0xd4   :  { %v145_v26 = vpop.eup %144  ;;  %v70_v27 = vmul.f32 %v143_v25, %v59_v24 }
  0xd6   :  { %v73_v29 = vmul.f32 %v145_v26, %v70_v27 }
  0xd7   :  { %v147_v30 = vpop.eup %146 }
  0xd8   :  { %v149_v31 = vpop.eup %148  ;;  %v101_v32 = vmul.f32 %v147_v30, %v90_v28  ;;  %v75_v33 = vsel %vm74_vm1, %v73_v29, 0.0 }
  0xd9   :  { %76 = vadd.xlane.f32.xlu0 %v75_v33 }
  0xda   :  { %v104_v34 = vmul.f32 %v149_v31, %v101_v32 }
  0xdc   :  { %v105_v35 = vsel %vm74_vm1, %v104_v34, 0.0 }
  0xdd   :  { %106 = vadd.xlane.f32.xlu1 %v105_v35 }
 0x166   :  { %v77_v36 = vpop.xlane.xlu0 %76 }
 0x167   :  { %v78_v37 = vrot.slane %v77_v36, 4 }
 0x169   :  { %v79_v38 = vadd.f32 %v78_v37, %v77_v36 }
 0x16a   :  { %v107_v39 = vpop.xlane.xlu1 %106 }
 0x16b   :  { %v80_v40 = vrot.slane %v79_v38, 2  ;;  %v108_v41 = vrot.slane %v107_v39, 4 }
 0x16d   :  { %v109_v42 = vadd.f32 %v108_v41, %v107_v39  ;;  %v81_v43 = vadd.f32 %v80_v40, %v79_v38 }
 0x16f   :  { %v110_v44 = vrot.slane %v109_v42, 2  ;;  %v82_v45 = vrot.slane %v81_v43, 1 }
 0x171   :  { %v111_v46 = vadd.f32 %v110_v44, %v109_v42  ;;  %v83_v47 = vadd.f32 %v82_v45, %v81_v43 }
 0x173   :  { %134 = vpush %v83_v47  ;;  %v112_v48 = vrot.slane %v111_v46, 1 }
 0x175   :  { %v113_v49 = vadd.f32 %v112_v48, %v111_v46 }
 0x177   :  { %136 = vpush %v113_v49 }
 0x1a4   :  { %s135_s2 = spop %134 }
 0x1a8   :  { %s137_s26 = spop %136 }
 0x1a9   :  { %s115_s27 = sadd.f32 %s137_s26, %s135_s2 }
 0x1ab   :  { %v116_v50 = vstv %s115_s27 }
 0x1ac   :  { %117 = vst [vmem:[#allocation8] sm:$0xff] %v116_v50 }
 0x1ad   :  { %227 = shalt.err (!%p224_p0)
}
 0x1ae   :  { %s228_s5 = scalar_lea.hbm %s334_s4, 128 }
 0x1af   :  { %p229_p1 = scmp.ne.s32.totalorder %s334_s4, %s228_s5  ;;  %p232_p2 = scmp.lt.u32.totalorder %s228_s5, %s334_s4 }
 0x1b1   :  { %p234_p3 = pnand %p232_p2, %p229_p1 }
 0x1b3   :  { %237 = shalt.err (!%p234_p3)
}
 0x1b4   :  { %127 = dma.vmem_to_hbm [thread:$0]  %s125_s25, 128, %s334_s4, [#allocation4]  }
 0x1b5   :  { %242 = dma.done.wait [#allocation4], 128  }
 0x1b6   :  { %243 = vsyncadd [#allocation4], 4294967168 }
 0x1b7   :  { %131 = vsyncpa [#allocation3], 1 }
 0x1b8   :  { %132 = vsyncpa [#allocation6], 1 }
 0x1b9   :  { %133 = vsyncpa [#allocation4], 1 }

</bundles_post_ra>
